<compile_context>
chip_gen: v7x
topology: tpu7x:2x2x1
jax: 0.10.0
libtpu: 0.0.40
codegen_flags: <defaults>
</compile_context>

<pallas_src>
import math

import jax
import jax.numpy as jnp
from jax import lax
from jax.experimental import pallas as pl
from jax.experimental.pallas import tpu as pltpu


def _round_up(x: int, m: int) -> int:
    return ((x + m - 1) // m) * m


def _sublane_min(dtype) -> int:
    # Packed sub-32-bit dtypes need deeper sublane tiles:
    # (8,128) f32, (16,128) bf16, (32,128) int8/fp8.
    return {4: 8, 2: 16, 1: 32}.get(jnp.dtype(dtype).itemsize, 8)


def _pick_tile(padded_dim: int, target: int, unit: int) -> int:
    """Largest multiple of `unit` that divides `padded_dim` and is <= target.

    Keeps the grid exact over the 128-padded dim, so N/K are never padded
    beyond the layout minimum."""
    units = max(1, padded_dim // unit)
    max_units = max(1, min(units, max(target, unit) // unit))
    for d in range(max_units, 0, -1):
        if units % d == 0:
            return d * unit
    return unit


def _linear_bias_kernel(x_ref, w_ref, b_ref, o_ref, acc_ref):
    # x_ref: (tm, tk), w_ref: (tn, tk), b_ref: (1, tn), o_ref: (tm, tn)
    k = pl.program_id(2)

    @pl.when(k == 0)
    def _():
        # Fold the bias into the accumulator init (no epilogue add needed).
        acc_ref[...] = jnp.broadcast_to(
            b_ref[...].astype(jnp.float32), acc_ref.shape)

    acc_ref[...] += lax.dot_general(
        x_ref[...], w_ref[...],
        dimension_numbers=(((1,), (1,)), ((), ())),   # x @ W^T: contract K with K
        preferred_element_type=jnp.float32,
    )

    @pl.when(k == pl.num_programs(2) - 1)
    def _():
        o_ref[...] = acc_ref[...].astype(o_ref.dtype)


def _linear_nobias_kernel(x_ref, w_ref, o_ref, acc_ref):
    k = pl.program_id(2)

    @pl.when(k == 0)
    def _():
        acc_ref[...] = jnp.zeros_like(acc_ref)

    acc_ref[...] += lax.dot_general(
        x_ref[...], w_ref[...],
        dimension_numbers=(((1,), (1,)), ((), ())),
        preferred_element_type=jnp.float32,
    )

    @pl.when(k == pl.num_programs(2) - 1)
    def _():
        o_ref[...] = acc_ref[...].astype(o_ref.dtype)


def parameter_free_linear(x, weight, bias=None, *,
                          tm_target=512, tn_target=512, tk_target=1024):
    """Pallas implementation of F.linear(x, weight, bias).

    x:      (..., in_features)
    weight: (out_features, in_features)  -- used as stored (NT contraction)
    bias:   (out_features,) or None
    returns (..., out_features)
    """
    out_features, in_features = weight.shape
    assert x.shape[-1] == in_features

    lead_shape = x.shape[:-1]
    x2d = x.reshape(-1, in_features)
    m = x2d.shape[0]
    out_dtype = x.dtype

    # Degenerate cases: no rows, or no reduction dimension -> no pallas_call.
    if m == 0 or in_features == 0:
        if in_features == 0 and bias is not None:
            out2d = jnp.broadcast_to(bias.astype(out_dtype), (m, out_features))
        else:
            out2d = jnp.zeros((m, out_features), out_dtype)
        return out2d.reshape(*lead_shape, out_features)

    x_item = jnp.dtype(x.dtype).itemsize
    w_item = jnp.dtype(weight.dtype).itemsize
    sub_min = _sublane_min(x.dtype)

    # N/K padded only to the lane-layout minimum.
    n_p = _round_up(out_features, 128)
    k_p = _round_up(in_features, 128)

    # Small-M fast path: purely weight-streaming bound -> widen N/K tiles.
    if m <= 64:
        tn_target = max(tn_target, 1024)
        tk_target = max(tk_target, 1024)

    # M tile: dtype-aware sublane rounding; only x (small) gets tile-padded.
    tm = _round_up(min(tm_target, _round_up(m, sub_min)), sub_min)
    m_p = _round_up(m, tm)
    grid_m = m_p // tm

    # v7x has 2 TensorCores: when grid_m == 1, keep grid_n >= 2 so the
    # "parallel" N axis actually shards across both cores.
    tn_t = tn_target
    if grid_m == 1 and n_p >= 256:
        tn_t = min(tn_t, n_p // 2)
    tn = _pick_tile(n_p, tn_t, 128)
    tk = _pick_tile(k_p, tk_target, 128)

    grid = (grid_m, n_p // tn, k_p // tk)
    grid_n = grid[1]

    # Zero-pad only when genuinely required (zero K-padding keeps the partial
    # products exact).  W is copied only if its dims are not 128-aligned.
    if (m_p, k_p) != (m, in_features):
        x2d = jnp.pad(x2d, ((0, m_p - m), (0, k_p - in_features)))
    w = weight
    if (n_p, k_p) != (out_features, in_features):
        w = jnp.pad(w, ((0, n_p - out_features), (0, k_p - in_features)))

    x_spec = pl.BlockSpec((tm, tk), lambda i, j, k: (i, k))
    w_spec = pl.BlockSpec((tn, tk), lambda i, j, k: (j, k))
    o_spec = pl.BlockSpec((tm, tn), lambda i, j, k: (i, j))

    # Real streaming traffic: X re-read once per N tile-column, W once per M
    # tile-row, output written once.
    bytes_accessed = (m_p * k_p * x_item * grid_n
                      + n_p * k_p * w_item * grid_m
                      + m_p * n_p * jnp.dtype(out_dtype).itemsize)
    if bias is not None:
        bytes_accessed += n_p * jnp.dtype(bias.dtype).itemsize * grid_m
    cost = pl.CostEstimate(
        flops=2 * m_p * n_p * k_p,
        transcendentals=0,
        bytes_accessed=int(bytes_accessed),
    )

    # Double-buffered working set + f32 accumulator, with headroom.  An
    # explicit limit matters on v5e (16 MiB default scoped VMEM); the cap
    # stays well under v7x's 64 MiB physical VMEM.
    ws = (2 * tm * tk * x_item + 2 * tn * tk * w_item
          + 2 * tm * tn * jnp.dtype(out_dtype).itemsize + tm * tn * 4)
    vmem_limit = min(max(ws * 3 // 2 + (2 << 20), 32 << 20), 48 << 20)

    cparams = pltpu.CompilerParams(
        dimension_semantics=("parallel", "parallel", "arbitrary"),
        vmem_limit_bytes=int(vmem_limit),
    )
    scratch = [pltpu.VMEM((tm, tn), jnp.float32)]
    out_shape = jax.ShapeDtypeStruct((m_p, n_p), out_dtype)

    if bias is not None:
        b = bias
        if n_p != out_features:
            b = jnp.pad(b, (0, n_p - out_features))
        b2d = b.reshape(1, n_p)
        out2d = pl.pallas_call(
            _linear_bias_kernel,
            out_shape=out_shape,
            grid_spec=pltpu.PrefetchScalarGridSpec(
                num_scalar_prefetch=0,
                grid=grid,
                in_specs=[x_spec, w_spec,
                          pl.BlockSpec((1, tn), lambda i, j, k: (0, j))],
                out_specs=o_spec,
                scratch_shapes=scratch,
            ),
            compiler_params=cparams,
            cost_estimate=cost,
        )(x2d, w, b2d)
    else:
        out2d = pl.pallas_call(
            _linear_nobias_kernel,
            out_shape=out_shape,
            grid_spec=pltpu.PrefetchScalarGridSpec(
                num_scalar_prefetch=0,
                grid=grid,
                in_specs=[x_spec, w_spec],
                out_specs=o_spec,
                scratch_shapes=scratch,
            ),
            compiler_params=cparams,
            cost_estimate=cost,
        )(x2d, w)

    if (m_p, n_p) != (m, out_features):
        out2d = out2d[:m, :out_features]
    return out2d.reshape(*lead_shape, out_features)


def init_parameter_free_linear(key, in_features, out_features, bias=True,
                               dtype=jnp.float32):
    """Replicates ParameterFreeLinear.reset_tensors:
       weight ~ kaiming_uniform_(a=sqrt(5)) => U(-1/sqrt(fan_in), 1/sqrt(fan_in))
       bias   ~ U(-1/sqrt(fan_in), 1/sqrt(fan_in))
    """
    kw, kb = jax.random.split(key)
    bound = 1.0 / math.sqrt(in_features)
    weight = jax.random.uniform(
        kw, (out_features, in_features), dtype=dtype, minval=-bound, maxval=bound)
    if bias:
        b = jax.random.uniform(
            kb, (out_features,), dtype=dtype, minval=-bound, maxval=bound)
    else:
        b = None
    return weight, b


if __name__ == "__main__":
    key = jax.random.PRNGKey(0)
    k_x, k_p, k_x2, k_x3 = jax.random.split(key, 4)
    HI = jax.lax.Precision.HIGHEST

    # 1) Module-consistent small shapes: batch=2, seq=8, in=32, out=64.
    batch, seq, in_features, out_features = 2, 8, 32, 64
    x = jax.random.normal(k_x, (batch, seq, in_features), dtype=jnp.float32)
    weight, bias = init_parameter_free_linear(k_p, in_features, out_features,
                                              bias=True)
    out = jax.block_until_ready(parameter_free_linear(x, weight, bias))
    ref = jnp.matmul(x, weight.T, precision=HI) + bias
    assert out.shape == (batch, seq, out_features)
    assert jnp.allclose(out, ref, atol=1e-5, rtol=1e-5)

    # 2) No-bias variant.
    out_nb = jax.block_until_ready(parameter_free_linear(x, weight, None))
    assert jnp.allclose(out_nb, jnp.matmul(x, weight.T, precision=HI),
                        atol=1e-5, rtol=1e-5)

    # 3) Ragged shapes + multi-step K reduction (small explicit tiles exercise
    #    the accumulator / padding paths: K=160 -> k_p=256, two K steps).
    in2, out2 = 160, 96
    x2 = jax.random.normal(k_x2, (5, in2), dtype=jnp.float32)
    w2, b2 = init_parameter_free_linear(k_p, in2, out2, bias=True)
    out2_ = jax.block_until_ready(
        parameter_free_linear(x2, w2, b2,
                              tm_target=8, tn_target=128, tk_target=128))
    ref2 = jnp.matmul(x2, w2.T, precision=HI) + b2
    assert jnp.allclose(out2_, ref2, atol=1e-4, rtol=1e-4)

    # 4) bf16 small-M path (dtype-aware sublane rounding: tm -> 16).
    xb = jax.random.normal(k_x3, (4, in_features), dtype=jnp.bfloat16)
    wb = weight.astype(jnp.bfloat16)
    bb = bias.astype(jnp.bfloat16)
    out_bf = jax.block_until_ready(parameter_free_linear(xb, wb, bb))
    ref_bf = (jnp.matmul(xb.astype(jnp.float32), wb.astype(jnp.float32).T,
                         precision=HI) + bb.astype(jnp.float32))
    assert jnp.allclose(out_bf.astype(jnp.float32), ref_bf, atol=2e-2, rtol=2e-2)

    # 5) Zero-row edge case (no pallas_call emitted).
    out_empty = parameter_free_linear(
        jnp.zeros((0, in_features), jnp.float32), weight, bias)
    assert out_empty.shape == (0, out_features)

    print("KERNEL_OK")
</pallas_src>

<mosaic_0001>
module attributes {stable_mosaic.version = 11 : i64} {
  func.func @_linear_bias_kernel(%arg0: i32, %arg1: i32, %arg2: i32, %arg3: memref<16x128xf32, #tpu.memory_space<vmem>>, %arg4: memref<128x128xf32, #tpu.memory_space<vmem>>, %arg5: memref<1x128xf32, #tpu.memory_space<vmem>>, %arg6: memref<16x128xf32, #tpu.memory_space<vmem>>, %arg7: memref<16x128xf32, #tpu.memory_space<vmem>>) attributes {dimension_semantics = [#tpu.dimension_semantics<parallel>, #tpu.dimension_semantics<parallel>, #tpu.dimension_semantics<arbitrary>], iteration_bounds = array<i64: 1, 1, 1>, scalar_prefetch = 0 : i64, scratch_operands = 1 : i64, tpu.core_type = #tpu.core_type<tc>, window_params = [{transform_indices = @transform_0, window_bounds = array<i64: 16, 128>}, {transform_indices = @transform_1, window_bounds = array<i64: 128, 128>}, {transform_indices = @transform_2, window_bounds = array<i64: 1, 128>}, {transform_indices = @transform_3, window_bounds = array<i64: 16, 128>}]} {
    %c0_i32 = arith.constant 0 : i32
    %0 = arith.cmpi eq, %arg2, %c0_i32 : i32
    %1 = arith.extui %0 : i1 to i32
    %c0_i32_0 = arith.constant 0 : i32
    %2 = arith.cmpi ne, %1, %c0_i32_0 : i32
    scf.if %2 {
      %c0_10 = arith.constant 0 : index
      %c0_11 = arith.constant 0 : index
      %12 = vector.load %arg5[%c0_10, %c0_11] : memref<1x128xf32, #tpu.memory_space<vmem>>, vector<1x128xf32>
      %13 = vector.shape_cast %12 : vector<1x128xf32> to vector<1x128xf32>
      %14 = vector.broadcast %13 : vector<1x128xf32> to vector<16x128xf32>
      %c0_12 = arith.constant 0 : index
      %c0_13 = arith.constant 0 : index
      %15 = vector.load %arg7[%c0_12, %c0_13] : memref<16x128xf32, #tpu.memory_space<vmem>>, vector<16x128xf32>
      tpu.vector_store %arg7[%c0_12, %c0_13], %14 {strides = array<i32>} : memref<16x128xf32, #tpu.memory_space<vmem>>, vector<16x128xf32>,
    } else {
    }
    %c0 = arith.constant 0 : index
    %c0_1 = arith.constant 0 : index
    %3 = vector.load %arg7[%c0, %c0_1] : memref<16x128xf32, #tpu.memory_space<vmem>>, vector<16x128xf32>
    %c0_2 = arith.constant 0 : index
    %c0_3 = arith.constant 0 : index
    %4 = vector.load %arg3[%c0_2, %c0_3] : memref<16x128xf32, #tpu.memory_space<vmem>>, vector<16x128xf32>
    %c0_4 = arith.constant 0 : index
    %c0_5 = arith.constant 0 : index
    %5 = vector.load %arg4[%c0_4, %c0_5] : memref<128x128xf32, #tpu.memory_space<vmem>>, vector<128x128xf32>
    %cst = arith.constant dense<0.000000e+00> : vector<16x128xf32>
    %6 = tpu.matmul %4, %5, %cst {dimension_numbers = #tpu.dot_dimension_numbers<[1], [1], [0], [0], [0, 0, 1, 0], [], []>} : vector<16x128xf32>, vector<128x128xf32>, vector<16x128xf32> -> vector<16x128xf32>
    %7 = arith.addf %3, %6 : vector<16x128xf32>
    %c0_6 = arith.constant 0 : index
    %c0_7 = arith.constant 0 : index
    %8 = vector.load %arg7[%c0_6, %c0_7] : memref<16x128xf32, #tpu.memory_space<vmem>>, vector<16x128xf32>
    tpu.vector_store %arg7[%c0_6, %c0_7], %7 {strides = array<i32>} : memref<16x128xf32, #tpu.memory_space<vmem>>, vector<16x128xf32>,
    %c0_i32_8 = arith.constant 0 : i32
    %9 = arith.cmpi eq, %arg2, %c0_i32_8 : i32
    %10 = arith.extui %9 : i1 to i32
    %c0_i32_9 = arith.constant 0 : i32
    %11 = arith.cmpi ne, %10, %c0_i32_9 : i32
    scf.if %11 {
      %c0_10 = arith.constant 0 : index
      %c0_11 = arith.constant 0 : index
      %12 = vector.load %arg7[%c0_10, %c0_11] : memref<16x128xf32, #tpu.memory_space<vmem>>, vector<16x128xf32>
      %c0_12 = arith.constant 0 : index
      %c0_13 = arith.constant 0 : index
      %13 = vector.load %arg6[%c0_12, %c0_13] : memref<16x128xf32, #tpu.memory_space<vmem>>, vector<16x128xf32>
      tpu.vector_store %arg6[%c0_12, %c0_13], %12 {strides = array<i32>} : memref<16x128xf32, #tpu.memory_space<vmem>>, vector<16x128xf32>,
    } else {
    }
    return
  }
  func.func @transform_0(%arg0: i32, %arg1: i32, %arg2: i32) -> (i32, i32) {
    %c0_i32 = arith.constant 0 : i32
    return %arg0, %arg2 : i32, i32
  }
  func.func @transform_1(%arg0: i32, %arg1: i32, %arg2: i32) -> (i32, i32) {
    %c0_i32 = arith.constant 0 : i32
    return %arg1, %arg2 : i32, i32
  }
  func.func @transform_2(%arg0: i32, %arg1: i32, %arg2: i32) -> (i32, i32) {
    %c0_i32 = arith.constant 0 : i32
    %c0_i32_0 = arith.constant 0 : i32
    return %c0_i32, %arg1 : i32, i32
  }
  func.func @transform_3(%arg0: i32, %arg1: i32, %arg2: i32) -> (i32, i32) {
    %c0_i32 = arith.constant 0 : i32
    return %arg0, %arg1 : i32, i32
  }
}

</mosaic_0001>

<bundles_post_ra>
// kernel: tpu_custom_call.1
= control target key start
LH: loop header
LB: loop body
LE: loop exit
PB: predicated region body
PF: predicated region fallthrough
CT: control target
= control target key end

     0   :  { %8 = vsyncpa [#allocation4], 0  ;;  %s416_s0 = inlined_call_operand.hbm [shape: f32[16,128], index: 0, kind: input, shape index: {}]   ;;  %s417_s1 = inlined_call_operand.hbm [shape: f32[128,128], index: 1, kind: input, shape index: {}]   ;;  %s418_s2 = inlined_call_operand.vmem [shape: f32[1,128], index: 2, kind: input, shape index: {}]   ;;  %s419_s3 = inlined_call_operand.hbm [shape: f32[16,128], index: 3, kind: output, shape index: {}]  }
   0x1   :  { %9 = vsyncpa [#allocation7], 0 }
   0x2   :  { %10 = vsyncpa [#allocation5], 0  ;;  %s343_s12 = smov [#allocation3]   ;;  %s271_s16 = scalar_lea.hbm %s416_s0, 256 }
   0x3   :  { %s16_s13 = sshll.u32 %s343_s12, 4  ;;  %p272_p0 = scmp.ne.s32.totalorder %s416_s0, %s271_s16  ;;  %s17_s13 = int_to_ptr.vmem [resolvable:$true] %s16_s13 }
   0x4   :  { %p275_p1 = scmp.lt.u32.totalorder %s271_s16, %s416_s0 }
   0x6   :  { %p277_p2 = pnand %p275_p1, %p272_p0 }
   0x8   :  { %280 = shalt.err (!%p277_p2)
}
   0x9   :  { %s281_s21 = scalar_lea.vmem %s17_s13, 256  ;;  %p286_p4 = scmp.lt.s32.totalorder %s17_s13, %s17_s13 }
   0xa   :  { %p282_p3 = scmp.ne.s32.totalorder %s17_s13, %s281_s21  ;;  %p287_p5 = scmp.lt.s32.totalorder %s281_s21, %s281_s21 }
   0xc   :  { %p288_p6 = por %p287_p5, %p286_p4 }
   0xe   :  { %p289_p7 = pnand %p288_p6, %p282_p3 }
  0x10   :  { %292 = shalt.err (!%p289_p7)
}
  0x11   :  { %s344_s22 = smov 128   ;;  %s345_s23 = smov 8  }
  0x12   :  { %22 = dma.hbm_to_vmem [thread:$0]  %s416_s0, 256, %s17_s13, [#allocation4], %s344_s22, %s344_s22, %s345_s23  }
  0x13   :  { %s346_s26 = smov [#allocation6]   ;;  %s293_s30 = scalar_lea.hbm %s417_s1, 2048 }
  0x14   :  { %s28_s27 = sshll.u32 %s346_s26, 4  ;;  %p294_p8 = scmp.ne.s32.totalorder %s417_s1, %s293_s30  ;;  %s29_s27 = int_to_ptr.vmem [resolvable:$true] %s28_s27 }
  0x15   :  { %p297_p9 = scmp.lt.u32.totalorder %s293_s30, %s417_s1 }
  0x17   :  { %p299_p10 = pnand %p297_p9, %p294_p8 }
  0x19   :  { %302 = shalt.err (!%p299_p10)
}
  0x1a   :  { %s303_s8 = scalar_lea.vmem %s29_s27, 2048  ;;  %p308_p12 = scmp.lt.s32.totalorder %s29_s27, %s29_s27 }
  0x1b   :  { %p304_p11 = scmp.ne.s32.totalorder %s29_s27, %s303_s8  ;;  %p309_p13 = scmp.lt.s32.totalorder %s303_s8, %s303_s8 }
  0x1d   :  { %p310_p0 = por %p309_p13, %p308_p12 }
  0x1f   :  { %p311_p1 = pnand %p310_p0, %p304_p11 }
  0x21   :  { %314 = shalt.err (!%p311_p1)
}
  0x22   :  { %34 = dma.hbm_to_vmem [thread:$0]  %s417_s1, 2048, %s29_s27, [#allocation7], %s344_s22, %s344_s22, %s345_s23  }
  0x23   :  { %337 = dma.done.wait [#allocation4], 256  }
  0x24   :  { %338 = vsyncadd [#allocation4], 4294967040 }
  0x25   :  { %339 = dma.done.wait [#allocation7], 2048  }
  0x26   :  { %340 = vsyncadd [#allocation7], 4294965248  ;;  %v60_v0 = vld [vmem:[#allocation6] sm:$0xff]  ;;  %v61_v1 = vld [vmem:[#allocation6 + $0x8] sm:$0xff]  ;;  %s347_s11 = smov [#allocation8]  }
  0x27   :  { %v62_v2 = vld [vmem:[#allocation6 + $0x10] sm:$0xff]  ;;  %v234_v3 = vpack.c.bf16 %v61_v1, %v60_v0  ;;  %v63_v4 = vld [vmem:[#allocation6 + $0x18] sm:$0xff]  ;;  %v64_v7 = vld [vmem:[#allocation6 + $0x20] sm:$0xff]  ;;  %s167_s12 = sshll.u32 %s347_s11, 4  ;;  %s168_s12 = int_to_ptr.vmem [resolvable:$true] %s167_s12 }
  0x28   :  { %v238_v5 = vpack.c.bf16 %v63_v4, %v62_v2  ;;  %v58_v6 = vld [vmem:[#allocation3] sm:$0xff]  ;;  %v65_v8 = vld [vmem:[#allocation6 + $0x28] sm:$0xff]  ;;  %v67_v11 = vld [vmem:[#allocation6 + $0x38] sm:$0xff]  ;;  %s315_s13 = scalar_lea.vmem %s168_s12, 256  ;;  %p320_p3 = scmp.lt.s32.totalorder %s168_s12, %s168_s12 }
  0x29   :  { %235 = vmatprep.subr.bf16.mxu0 %v234_v3  ;;  %231 = vmatprep.mubr.f32.mxu0 %v58_v6  ;;  %v242_v9 = vpack.c.bf16 %v65_v8, %v64_v7  ;;  %v66_v10 = vld [vmem:[#allocation6 + $0x30] sm:$0xff]  ;;  %v68_v13 = vld [vmem:[#allocation6 + $0x40] sm:$0xff]  ;;  %v69_v14 = vld [vmem:[#allocation6 + $0x48] sm:$0xff]  ;;  %p316_p2 = scmp.ne.s32.totalorder %s168_s12, %s315_s13  ;;  %p321_p4 = scmp.lt.s32.totalorder %s315_s13, %s315_s13 }
  0x2a   :  { %237 = vmatpush3.bf16.xpose.msra.mxu0 %v234_v3  ;;  %v246_v12 = vpack.c.bf16 %v67_v11, %v66_v10  ;;  %v250_v15 = vpack.c.bf16 %v69_v14, %v68_v13  ;;  %v70_v16 = vld [vmem:[#allocation6 + $0x50] sm:$0xff]  ;;  %v71_v17 = vld [vmem:[#allocation6 + $0x58] sm:$0xff]  ;;  %v72_v19 = vld [vmem:[#allocation6 + $0x60] sm:$0xff] }
  0x2b   :  { %239 = vmatprep.subr.bf16.mxu0 %v238_v5  ;;  %v254_v18 = vpack.c.bf16 %v71_v17, %v70_v16  ;;  %v73_v20 = vld [vmem:[#allocation6 + $0x68] sm:$0xff]  ;;  %v74_v22 = vld [vmem:[#allocation6 + $0x70] sm:$0xff]  ;;  %v75_v23 = vld [vmem:[#allocation6 + $0x78] sm:$0xff]  ;;  %p322_p5 = por %p321_p4, %p320_p3 }
  0x2c   :  { %v258_v21 = vpack.c.bf16 %v73_v20, %v72_v19  ;;  %v262_v24 = vpack.c.bf16 %v75_v23, %v74_v22  ;;  %v59_v25 = vld [vmem:[#allocation3 + $0x8] sm:$0xff]  ;;  %v180_v26 = vld [vmem:[%s418_s2] ss:$0 sm:$0xff] }
  0x2d   :  { %p323_p6 = pnand %p322_p5, %p316_p2 }
  0x32   :  { %241 = vmatpush3.bf16.xpose.msra.mxu0 %v238_v5 }
  0x33   :  { %243 = vmatprep.subr.bf16.mxu0 %v242_v9 }
  0x3a   :  { %245 = vmatpush3.bf16.xpose.msra.mxu0 %v242_v9 }
  0x3b   :  { %247 = vmatprep.subr.bf16.mxu0 %v246_v12 }
  0x42   :  { %249 = vmatpush3.bf16.xpose.msra.mxu0 %v246_v12 }
  0x43   :  { %251 = vmatprep.subr.bf16.mxu0 %v250_v15 }
  0x4a   :  { %253 = vmatpush3.bf16.xpose.msra.mxu0 %v250_v15 }
  0x4b   :  { %255 = vmatprep.subr.bf16.mxu0 %v254_v18 }
  0x52   :  { %257 = vmatpush3.bf16.xpose.msra.mxu0 %v254_v18 }
  0x53   :  { %259 = vmatprep.subr.bf16.mxu0 %v258_v21 }
  0x5a   :  { %261 = vmatpush3.bf16.xpose.msra.mxu0 %v258_v21 }
  0x5b   :  { %263 = vmatprep.subr.bf16.mxu0 %v262_v24 }
  0x62   :  { %265 = vmatpush3.bf16.xpose.msra.mxu0 %v262_v24 }
  0x69   :  { %232 = vmatmul.mubr.f32.vlgmr.msra.gmra.mrb[0].mxu0 %v59_v25 }
 0x13c   :  { %v233_v27 = vpop.f32.mrb[0].mxu0 }
 0x13d   :  { %v152_v28 = vadd.f32 %v233_v27, %v180_v26  ;;  %v142_v29 = vpop.f32.mrb[1].mxu0 }
 0x13e   :  { %v151_v30 = vadd.f32 %v180_v26, %v142_v29 }
 0x13f   :  { %161 = vst [vmem:[#allocation8 + $0x8] sm:$0xff] %v152_v28 }
 0x140   :  { %160 = vst [vmem:[#allocation8] sm:$0xff] %v151_v30 }
 0x141   :  { %326 = shalt.err (!%p323_p6)
}
 0x142   :  { %s327_s2 = scalar_lea.hbm %s419_s3, 256 }
 0x143   :  { %p328_p7 = scmp.ne.s32.totalorder %s419_s3, %s327_s2  ;;  %p331_p8 = scmp.lt.u32.totalorder %s327_s2, %s419_s3 }
 0x145   :  { %p333_p9 = pnand %p331_p8, %p328_p7 }
 0x147   :  { %336 = shalt.err (!%p333_p9)
}
 0x148   :  { %173 = dma.vmem_to_hbm [thread:$0]  %s168_s12, 256, %s419_s3, [#allocation5], %s344_s22, %s344_s22, %s345_s23  }
 0x149   :  { %341 = dma.done.wait [#allocation5], 256  }
 0x14a   :  { %342 = vsyncadd [#allocation5], 4294967040 }
 0x14b   :  { %177 = vsyncpa [#allocation4], 1 }
 0x14c   :  { %178 = vsyncpa [#allocation7], 1 }
 0x14d   :  { %179 = vsyncpa [#allocation5], 1 }

</bundles_post_ra>
